<compile_context>
chip_gen: v6e
topology: v6e:2x2x1
jax: 0.10.0
libtpu: 0.0.40
codegen_flags: <defaults>
</compile_context>

<pallas_src>
import functools

import jax
import jax.numpy as jnp
import numpy as np
from jax.experimental import pallas as pl
from jax.experimental.pallas import tpu as pltpu

# Fixed, non-trainable taps from GradientConv.__init__: [[0,-1,0],[-1,4,-1],[0,-1,0]].
_CENTER_TAP = 4.0
_EDGE_TAP = -1.0


def _gradient_conv_kernel(x_ref, o_ref, s_ref, *, H, W):
    """Grid step (n, j): j==0 computes the shared stencil; every j stores a channel slab.

    x_ref: (1, C, HW)   f32 VMEM  -- one batch element, spatially flattened (lane dense)
    o_ref: (1, To, HW)  f32 VMEM  -- To output channels of this batch element
    s_ref: (1, HW)      f32 VMEM  -- persistent scratch holding the stencil result
    """
    HW = H * W

    @pl.when(pl.program_id(1) == 0)
    def _():
        # Channel reduction (valid because the weight is identical across in-channels).
        s = jnp.sum(x_ref[...], axis=1)                          # (1, HW)

        # Edge masks on the flattened index, hoisted out of the tap computation.
        idx = jax.lax.broadcasted_iota(jnp.int32, (1, HW), 1)
        if W & (W - 1) == 0:                                      # power-of-two width
            col = jnp.bitwise_and(idx, W - 1)
        else:
            col = jax.lax.rem(idx, W)
        first_row = idx < W
        last_row = idx >= (HW - W)
        first_col = col == 0
        last_col = col == (W - 1)

        # Replication-padded 4-neighbour taps via XLU lane rolls + edge masks.
        # jnp.roll semantics: roll(s, +k)[i] == s[i - k].
        up    = jnp.where(first_row, s, pltpu.roll(s, shift=W,      axis=1))
        down  = jnp.where(last_row,  s, pltpu.roll(s, shift=HW - W, axis=1))
        left  = jnp.where(first_col, s, pltpu.roll(s, shift=1,      axis=1))
        right = jnp.where(last_col,  s, pltpu.roll(s, shift=HW - 1, axis=1))

        # Corner taps of the Laplacian are exactly 0 -> only 5 taps / 4 rolls.
        s_ref[...] = _CENTER_TAP * s + _EDGE_TAP * (up + down + left + right)

    # Every output channel has identical weights -> broadcast the stencil over the slab.
    o_ref[...] = jnp.broadcast_to(s_ref[...][None], o_ref.shape)


def _pick_oc_tile(out_dim: int) -> int:
    # Output-channel slab per grid step: must be a multiple of 8 (or the full dim) and
    # divide out_dim; bounded to keep the double-buffered output block modest in VMEM.
    if out_dim % 8 != 0:
        return out_dim
    for cand in (64, 32, 16, 8):
        if out_dim % cand == 0:
            return cand
    return out_dim


def gradient_conv(x, out_dim):
    """GradientConv.forward: ReplicationPad2d(1) + conv2d with the fixed Laplacian weight
    expanded to (out_dim, in_dim, 3, 3).  x: (N, C, H, W) f32 -> (N, out_dim, H, W) f32."""
    N, C, H, W = x.shape
    HW = H * W
    To = _pick_oc_tile(out_dim)

    # Lane-dense layout: trailing contiguous reshape done outside the kernel (free).
    x_flat = x.reshape(N, C, HW)

    # Explicit VMEM budget: double-buffered in/out blocks + scratch, with slack.
    # TODO(synk): for very large images, additionally tile H (with a 1-row halo) so the
    # per-step blocks stay within v7x's 64 MiB VMEM.
    vmem_bytes = 2 * (C * HW * 4) + 2 * (To * HW * 4) + HW * 4
    vmem_limit = int(min(max(2 * vmem_bytes, 4 << 20), 64 << 20))

    out_flat = pl.pallas_call(
        functools.partial(_gradient_conv_kernel, H=H, W=W),
        out_shape=jax.ShapeDtypeStruct((N, out_dim, HW), jnp.float32),
        grid=(N, pl.cdiv(out_dim, To)),
        in_specs=[
            pl.BlockSpec((1, C, HW), lambda n, j: (n, 0, 0)),     # one batch element
        ],
        out_specs=pl.BlockSpec((1, To, HW), lambda n, j: (n, j, 0)),
        scratch_shapes=[pltpu.VMEM((1, HW), jnp.float32)],
        compiler_params=pltpu.CompilerParams(
            dimension_semantics=("parallel", "arbitrary"),
            vmem_limit_bytes=vmem_limit,
        ),
    )(x_flat)
    return out_flat.reshape(N, out_dim, H, W)


def gradient_conv_ref(x, weight):
    # Pure-JAX reference: ReplicationPad2d(1) + conv2d (NCHW / OIHW).
    xp = jnp.pad(x, ((0, 0), (0, 0), (1, 1), (1, 1)), mode="edge")
    return jax.lax.conv_general_dilated(
        xp, weight, window_strides=(1, 1), padding="VALID",
        dimension_numbers=("NCHW", "OIHW", "NCHW"))


if __name__ == "__main__":
    in_dim, out_dim = 4, 4
    N, H, W = 2, 16, 16

    # Deterministic parameter init, exactly as the module's __init__.
    base = jnp.array([[0., -1., 0.], [-1., 4., -1.], [0., -1., 0.]], jnp.float32)
    weight = jnp.broadcast_to(base, (out_dim, in_dim, 3, 3))
    # Kernel contract check: weight must be the broadcast fixed Laplacian.
    assert np.allclose(np.asarray(weight), np.asarray(base)[None, None]), \
        "GradientConv weight must be the fixed broadcast Laplacian"

    key = jax.random.PRNGKey(0)
    x = jax.random.normal(key, (N, in_dim, H, W), jnp.float32)

    out = gradient_conv(x, out_dim)
    out = jax.block_until_ready(out)

    ref = gradient_conv_ref(x, weight)
    assert out.shape == (N, out_dim, H, W), out.shape
    err = float(np.max(np.abs(np.asarray(out) - np.asarray(ref))))
    assert np.allclose(np.asarray(out), np.asarray(ref), atol=1e-4, rtol=1e-4), err
    print("KERNEL_OK")
</pallas_src>

<mosaic_0001>
module attributes {stable_mosaic.version = 11 : i64} {
  func.func @_gradient_conv_kernel(%arg0: i32, %arg1: i32, %arg2: memref<1x4x256xf32, #tpu.memory_space<vmem>>, %arg3: memref<1x4x256xf32, #tpu.memory_space<vmem>>, %arg4: memref<1x256xf32, #tpu.memory_space<vmem>>) attributes {dimension_semantics = [#tpu.dimension_semantics<parallel>, #tpu.dimension_semantics<arbitrary>], iteration_bounds = array<i64: 2, 1>, scalar_prefetch = 0 : i64, scratch_operands = 1 : i64, tpu.core_type = #tpu.core_type<tc>, window_params = [{transform_indices = @transform_0, window_bounds = array<i64: 1, 4, 256>}, {transform_indices = @transform_1, window_bounds = array<i64: 1, 4, 256>}]} {
    %c0_i32 = arith.constant 0 : i32
    %0 = arith.cmpi eq, %arg1, %c0_i32 : i32
    %1 = arith.extui %0 : i1 to i32
    %c0_i32_0 = arith.constant 0 : i32
    %2 = arith.cmpi ne, %1, %c0_i32_0 : i32
    scf.if %2 {
      %c0_5 = arith.constant 0 : index
      %c0_6 = arith.constant 0 : index
      %c0_7 = arith.constant 0 : index
      %8 = vector.load %arg2[%c0_5, %c0_6, %c0_7] : memref<1x4x256xf32, #tpu.memory_space<vmem>>, vector<1x4x256xf32>
      %cst = arith.constant dense<0.000000e+00> : vector<1x256xf32>
      %9 = vector.multi_reduction <add>, %8, %cst [1] : vector<1x4x256xf32> to vector<1x256xf32>
      %10 = tpu.iota {dimensions = array<i32: 1>} : vector<1x256xi32>
      %c15_i32 = arith.constant 15 : i32
      %11 = vector.broadcast %c15_i32 : i32 to vector<1x256xi32>
      %12 = arith.andi %10, %11 : vector<1x256xi32>
      %c16_i32 = arith.constant 16 : i32
      %13 = vector.broadcast %c16_i32 : i32 to vector<1x256xi32>
      %14 = arith.cmpi slt, %10, %13 : vector<1x256xi32>
      %c240_i32 = arith.constant 240 : i32
      %15 = vector.broadcast %c240_i32 : i32 to vector<1x256xi32>
      %16 = arith.cmpi sge, %10, %15 : vector<1x256xi32>
      %c0_i32_8 = arith.constant 0 : i32
      %17 = vector.broadcast %c0_i32_8 : i32 to vector<1x256xi32>
      %18 = arith.cmpi eq, %12, %17 : vector<1x256xi32>
      %c15_i32_9 = arith.constant 15 : i32
      %19 = vector.broadcast %c15_i32_9 : i32 to vector<1x256xi32>
      %20 = arith.cmpi eq, %12, %19 : vector<1x256xi32>
      %c16_i32_10 = arith.constant 16 : i32
      %21 = tpu.dynamic_rotate %9 by %c16_i32_10 dim 1 : vector<1x256xf32>, i32 -> vector<1x256xf32>
      %22 = arith.select %14, %9, %21 : vector<1x256xi1>, vector<1x256xf32>
      %c240_i32_11 = arith.constant 240 : i32
      %23 = tpu.dynamic_rotate %9 by %c240_i32_11 dim 1 : vector<1x256xf32>, i32 -> vector<1x256xf32>
      %24 = arith.select %16, %9, %23 : vector<1x256xi1>, vector<1x256xf32>
      %c1_i32 = arith.constant 1 : i32
      %25 = tpu.dynamic_rotate %9 by %c1_i32 dim 1 : vector<1x256xf32>, i32 -> vector<1x256xf32>
      %26 = arith.select %18, %9, %25 : vector<1x256xi1>, vector<1x256xf32>
      %c255_i32 = arith.constant 255 : i32
      %27 = tpu.dynamic_rotate %9 by %c255_i32 dim 1 : vector<1x256xf32>, i32 -> vector<1x256xf32>
      %28 = arith.select %20, %9, %27 : vector<1x256xi1>, vector<1x256xf32>
      %cst_12 = arith.constant 4.000000e+00 : f32
      %29 = vector.broadcast %cst_12 : f32 to vector<1x256xf32>
      %30 = arith.mulf %29, %9 : vector<1x256xf32>
      %31 = arith.addf %22, %24 : vector<1x256xf32>
      %32 = arith.addf %31, %26 : vector<1x256xf32>
      %33 = arith.addf %32, %28 : vector<1x256xf32>
      %cst_13 = arith.constant -1.000000e+00 : f32
      %34 = vector.broadcast %cst_13 : f32 to vector<1x256xf32>
      %35 = arith.mulf %34, %33 : vector<1x256xf32>
      %36 = arith.addf %30, %35 : vector<1x256xf32>
      %c0_14 = arith.constant 0 : index
      %c0_15 = arith.constant 0 : index
      %37 = vector.load %arg4[%c0_14, %c0_15] : memref<1x256xf32, #tpu.memory_space<vmem>>, vector<1x256xf32>
      tpu.vector_store %arg4[%c0_14, %c0_15], %36 {strides = array<i32>} : memref<1x256xf32, #tpu.memory_space<vmem>>, vector<1x256xf32>,
    } else {
    }
    %c0 = arith.constant 0 : index
    %c0_1 = arith.constant 0 : index
    %3 = vector.load %arg4[%c0, %c0_1] : memref<1x256xf32, #tpu.memory_space<vmem>>, vector<1x256xf32>
    %4 = vector.shape_cast %3 : vector<1x256xf32> to vector<1x1x256xf32>
    %5 = vector.shape_cast %4 : vector<1x1x256xf32> to vector<1x1x256xf32>
    %6 = vector.broadcast %5 : vector<1x1x256xf32> to vector<1x4x256xf32>
    %c0_2 = arith.constant 0 : index
    %c0_3 = arith.constant 0 : index
    %c0_4 = arith.constant 0 : index
    %7 = vector.load %arg3[%c0_2, %c0_3, %c0_4] : memref<1x4x256xf32, #tpu.memory_space<vmem>>, vector<1x4x256xf32>
    tpu.vector_store %arg3[%c0_2, %c0_3, %c0_4], %6 {strides = array<i32>} : memref<1x4x256xf32, #tpu.memory_space<vmem>>, vector<1x4x256xf32>,
    return
  }
  func.func @transform_0(%arg0: i32, %arg1: i32) -> (i32, i32, i32) {
    %c0_i32 = arith.constant 0 : i32
    %c0_i32_0 = arith.constant 0 : i32
    %c0_i32_1 = arith.constant 0 : i32
    return %arg0, %c0_i32, %c0_i32_0 : i32, i32, i32
  }
  func.func @transform_1(%arg0: i32, %arg1: i32) -> (i32, i32, i32) {
    %c0_i32 = arith.constant 0 : i32
    %c0_i32_0 = arith.constant 0 : i32
    return %arg0, %arg1, %c0_i32 : i32, i32, i32
  }
}

</mosaic_0001>

<bundles_post_ra>
// kernel: tpu_custom_call.1
= control target key start
LH: loop header
LB: loop body
LE: loop exit
PB: predicated region body
PF: predicated region fallthrough
CT: control target
= control target key end

     0   :  { %6 = vsyncpa [#allocation4], 0  ;;  %s742_s0 = inlined_call_operand.hbm [shape: f32[2,4,256], index: 0, kind: input, shape index: {}]   ;;  %s743_s1 = inlined_call_operand.hbm [shape: f32[2,4,256], index: 1, kind: output, shape index: {}]  }
   0x1   :  { %8 = vsyncpa [#allocation4 + $0x1], 0 }
   0x2   :  { %9 = vsyncpa [#allocation5], 0 }
   0x3   :  { %11 = vsyncpa [#allocation5 + $0x1], 0  ;;  %s576_s6 = smov 0   ;;  %s578_s7 = smov 0  }
   0x4   :  { %s580_s8 = smov 0   ;;  %s582_s9 = smov 0  }
   0x5   :  { %s584_s10 = smov 0   ;;  %s586_s11 = smov 0  }
   0x6 LB: > { %s364_s12 = sadd.s32 4294967295, %s557_s11   ;;  %s365_s13 = sadd.s32 4294967294, %s557_s11   ;;  %s557_s11 = sphi %s586_s11, %s17_s11   ;;  %s553_s10 = sphi %s584_s10, %s763_s10   ;;  %s549_s9 = sphi %s582_s9, %s762_s9   ;;  %s545_s8 = sphi %s580_s8, %s761_s8   ;;  %s541_s7 = sphi %s578_s7, %s760_s7   ;;  %s537_s6 = sphi %s576_s6, %s759_s6  }
   0x7   : > { %s29_s14 = sadd.s32 1, %s553_s10  ;;  %s36_s15 = sadd.s32 1, %s545_s8 }
   0x8   : > { %p31_p0 = scmp.ge.s32.totalorder %s29_s14, 2  ;;  %p43_p1 = scmp.ne.s32.totalorder %s545_s8, %s541_s7 }
   0x9   : > { %p44_p2 = scmp.eq.s32.totalorder %s557_s11, 0  ;;  %p49_p3 = scmp.ne.s32.totalorder %s541_s7, %s537_s6 }
   0xa   : > { %s765_s14 = smov (%p31_p0, %s29_s14), 0  ;;  %p50_p5 = scmp.eq.s32.totalorder %s364_s12, 0 }
   0xb   : > { %p617_p4 = por %p44_p2, %p43_p1  ;;  %s33_s17 = ssub.s32 %s553_s10, %s765_s14 }
   0xc   : > { %p75_p6 = scmp.eq.s32.totalorder %s364_s12, 1  ;;  %p34_p7 = scmp.eq.s32.totalorder %s33_s17, 0 }
   0xd   : > { %p623_p8 = por %p50_p5, %p49_p3  ;;  %p81_p10 = scmp.eq.s32.totalorder %s365_s13, 1 }
   0xe   : > { %p627_p9 = por %p75_p6, %p43_p1  ;;  %p393_p13 = scmp.lt.s32.totalorder %s557_s11, 2 }
   0xf   : > { %s632_s20 = scalar_select %p34_p7, %s545_s8, %s36_s15  }
  0x10   : > { %p634_p11 = por %p81_p10, %p49_p3  ;;  %s101_s22 = sand.u32 1, %s545_s8  }
  0x11   : > { %s368_s23 = sshll.u32 %s101_s22, 3  ;;  %s379_s24 = sshll.u32 %s553_s10, 7 }
  0x12   : > { %s747_s21 = scalar_select %p634_p11, 1, 0 }
  0x13   : > { %s111_s27 = scalar_lea.hbm %s742_s0, %s379_s24  ;;  %s105_s28 = scalar_lea.vmem [#allocation3], %s368_s23 }
  0x14   : > { %s113_s29 = sshll.u32 %s105_s28, 4  ;;  %p647_p0 = pnand %p393_p13, %p617_p4  ;;  %s114_s29 = int_to_ptr.vmem [resolvable:$true] %s113_s29 }
  0x15   : > { %p371_p1 = scmp.ge.s32.totalorder %s557_s11, 1  ;;  %p118_p2 = scmp.lt.s32.totalorder %s557_s11, 3 }
  0x16   : > { %s102_s2 = scalar_lea.sflag [#allocation4], %s101_s22  ;;  %p451_p3 = pneg %p647_p0 }
  0x17   : > { %s462_s3 = scalar_lea.vmem %s114_s29, 128  ;;  %s559_s4 = smov [#allocation3]  }
  0x18   : > { %p463_p5 = scmp.ne.s32.totalorder %s114_s29, %s462_s3  ;;  %s467_s5 = sshll.u32 %s559_s4, 4  ;;  %s468_s5 = int_to_ptr.vmem [resolvable:$false] %s467_s5 }
  0x19   : > { %s469_s12 = scalar_lea.vmem %s468_s5, 256  ;;  %p470_p10 = scmp.lt.s32.totalorder %s114_s29, %s468_s5 }
  0x1a   : > { %p465_p6 = pnand %p463_p5, %p451_p3  ;;  %p471_p12 = scmp.lt.s32.totalorder %s469_s12, %s462_s3 }
  0x1c   : > { %p466_p7 = pneg %p465_p6  ;;  %p472_p4 = por %p471_p12, %p470_p10 }
  0x1e   : > { %p473_p13 = pnand %p472_p4, %p466_p7 }
  0x20   : > { %476 = shalt.err (!%p473_p13)
}
  0x21   : > { %388 = dma.hbm_to_vmem [thread:$0]  (!%p647_p0), %s111_s27, 128, %s114_s29, %s102_s2  }
  0x22   : > { %p119_p11 = pnand %p371_p1, %p118_p2 }
  0x23   : > { %s662_s13 = sand.u32 (!%p119_p11), 1, %s541_s7  }
  0x24   : > { %122 = sbr.rel (%p119_p11) target bundleno = 222 (0xde), region = 24  ;;  %s372_s15 = sshll.u32 (!%p119_p11), %s662_s13, 3 }
  0x25   : > { %s125_s16 = scalar_lea.sflag (!%p119_p11), [#allocation4], %s662_s13  ;;  %s128_s17 = scalar_lea.vmem (!%p119_p11), [#allocation3], %s372_s15 }
  0x29   : > { %528 = dma.done.wait (%p623_p8), %s125_s16, 128  }
  0x2a   : > { %530 = vsyncadd (%p623_p8), %s125_s16, 4294967168  ;;  %vm155_vm0 = vcmask 1043456   ;;  %v151_v0 = vld [vmem:[%s128_s17] sm:$0xff]  ;;  %s560_s22 = smov 112   ;;  %s561_s18 = smov 16   ;;  %v170_v16 = vlaneseq }
  0x2b   : > { %v156_v1 = vsel %vm155_vm0, %v151_v0, 0.0  ;;  %v153_v2 = vcombine.high %v151_v0, %v151_v0  ;;  %s562_s23 = smov 1   ;;  %s563_s24 = smov 127   ;;  %v564_v42 = vmov 1966171168  }
  0x2c   : > { %v157_v3 = vrot.slane %v156_v1, 4  ;;  %v171_v17 = vand.u32 127, %v170_v16  ;;  %v234_v43 = vunpack.c.l.s4 %v564_v42  ;;  %v237_v52 = vshrl.u32 %v170_v16, 7  ;;  %s380_s25 = sshll.u32 %s549_s9, 7  ;;  %s146_s26 = scalar_lea.vmem [#allocation6], %s372_s15 }
  0x2d   : > { %v163_v4 = vsel %vm155_vm0, %v153_v2, 0.0  ;;  %vm250_vm10 = vcmp.lt.s32.totalorder %v170_v16, 256  ;;  %s283_s27 = sshll.u32 %s146_s26, 4  ;;  %s281_s30 = scalar_lea.hbm %s743_s1, %s380_s25  ;;  %s284_s27 = int_to_ptr.vmem [resolvable:$true] %s283_s27 }
  0x2e   : > { %v158_v5 = vadd.f32 %v157_v3, %v156_v1  ;;  %v164_v6 = vrot.slane %v163_v4, 4  ;;  %v172_v20 = vadd.s32 128, %v171_v17  ;;  %vm195_vm1 = vcmp.lt.s32.totalorder %v171_v17, 112  ;;  %s267_s2 = scalar_lea.sflag [#allocation5], %s662_s13  ;;  %s477_s3 = scalar_lea.vmem %s284_s27, 128 }
  0x2f   : > { %v173_v24 = vand.u32 15, %v171_v17  ;;  %vm204_vm3 = vcmp.lt.s32.totalorder %v171_v17, 1  ;;  %vm175_vm4 = vcmp.lt.s32.totalorder %v171_v17, 16  ;;  %vm213_vm7 = vcmp.lt.s32.totalorder %v171_v17, 127  ;;  %p478_p8 = scmp.ne.s32.totalorder %s284_s27, %s477_s3  ;;  %s565_s4 = smov [#allocation6]  }
  0x30   : > { %v159_v7 = vrot.slane %v158_v5, 2  ;;  %v165_v8 = vadd.f32 %v164_v6, %v163_v4  ;;  %v174_v21 = vand.u32 15, %v172_v20  ;;  %vm178_vm2 = vcmp.ge.s32.totalorder %v172_v20, 240  ;;  %s481_s9 = sshll.u32 %s565_s4, 4  ;;  %s482_s9 = int_to_ptr.vmem [resolvable:$false] %s481_s9 }
  0x31   : > { %vm677_vm6 = vcmp.eq.s32.totalorder %v173_v24, 0  ;;  %vm684_vm8 = vcmp.eq.s32.totalorder %v173_v24, 15  ;;  %v235_v55 = vunpack.c.0.s8 %v234_v43  ;;  %v257_v3 = vsub.s32 0, %v237_v52  ;;  %p479_p11 = pnand %p478_p8, %p627_p9  ;;  %s483_s5 = scalar_lea.vmem %s482_s9, 256 }
  0x32   : > { %v160_v9 = vadd.f32 %v159_v7, %v158_v5  ;;  %v166_v10 = vrot.slane %v165_v8, 2  ;;  %vm673_vm5 = vcmp.eq.s32.totalorder %v174_v21, 0  ;;  %vm688_vm9 = vcmp.eq.s32.totalorder %v174_v21, 15  ;;  %p484_p0 = scmp.lt.s32.totalorder %s284_s27, %s482_s9  ;;  %p485_p1 = scmp.lt.s32.totalorder %s483_s5, %s477_s3 }
  0x33   : > { %v238_v61 = vsub.s32 %v235_v55, %v237_v52  ;;  %v261_v4 = vsub.s32 1, %v237_v52  ;;  %p480_p12 = pneg %p479_p11 }
  0x34   : > { %v161_v11 = vrot.slane %v160_v9, 1  ;;  %v167_v12 = vadd.f32 %v166_v10, %v165_v8  ;;  %p486_p2 = por %p485_p1, %p484_p0 }
  0x36   : > { %v162_v13 = vadd.f32 %v161_v11, %v160_v9  ;;  %v168_v14 = vrot.slane %v167_v12, 1  ;;  %p487_p3 = pnand %p486_p2, %p480_p12 }
  0x38   : > { %191 = vrot.lane.b32.xlu1 %v162_v13, %s560_s22  ;;  %183 = vrot.lane.b32.xlu0 %v162_v13, %s561_s18  ;;  %v169_v15 = vadd.f32 %v168_v14, %v167_v12  ;;  %v218_v51 = vmul.f32 4.0, %v162_v13 }
  0x3a   : > { %v219_v56 = vmul.f32 4.0, %v169_v15 }
  0x3c   : > { %200 = vrot.lane.b32.xlu0 %v162_v13, %s562_s23  ;;  %193 = vrot.lane.b32.xlu1 %v169_v15, %s560_s22 }
  0x40   : > { %202 = vrot.lane.b32.xlu1 %v169_v15, %s562_s23  ;;  %185 = vrot.lane.b32.xlu0 %v169_v15, %s561_s18 }
  0x44   : > { %211 = vrot.lane.b32.xlu1 %v169_v15, %s563_s24  ;;  %209 = vrot.lane.b32.xlu0 %v162_v13, %s563_s24 }
  0xaa   : > { %v192_v18 = vpop.permute.xlu1 %191  ;;  %v184_v19 = vpop.permute.xlu0 %183 }
  0xae   : > { %v201_v22 = vpop.permute.xlu0 %200  ;;  %v194_v23 = vpop.permute.xlu1 %193 }
  0xaf   : > { %v197_v25 = vsel %vm195_vm1, %v194_v23, %v192_v18  ;;  %v196_v35 = vsel %vm195_vm1, %v192_v18, %v194_v23 }
  0xb0   : > { %v199_v29 = vsel %vm178_vm2, %v169_v15, %v197_v25 }
  0xb2   : > { %v203_v28 = vpop.permute.xlu1 %202  ;;  %v186_v30 = vpop.permute.xlu0 %185 }
  0xb3   : > { %v205_v31 = vsel %vm204_vm3, %v201_v22, %v203_v28  ;;  %v206_v32 = vsel %vm204_vm3, %v203_v28, %v201_v22  ;;  %v187_v33 = vsel %vm175_vm4, %v184_v19, %v186_v30  ;;  %v188_v34 = vsel %vm175_vm4, %v186_v30, %v184_v19 }
  0xb4   : > { %v208_v36 = vsel %vm673_vm5, %v169_v15, %v205_v31  ;;  %v189_v37 = vsel %vm175_vm4, %v162_v13, %v188_v34  ;;  %v221_v38 = vadd.f32 %v199_v29, %v187_v33  ;;  %v207_v44 = vsel %vm677_vm6, %v162_v13, %v206_v32 }
  0xb5   : > { %v220_v39 = vadd.f32 %v196_v35, %v189_v37 }
  0xb6   : > { %v223_v45 = vadd.f32 %v221_v38, %v208_v36  ;;  %v212_v46 = vpop.permute.xlu1 %211  ;;  %v210_v47 = vpop.permute.xlu0 %209 }
  0xb7   : > { %v222_v48 = vadd.f32 %v220_v39, %v207_v44  ;;  %v214_v49 = vsel %vm213_vm7, %v210_v47, %v212_v46  ;;  %v215_v50 = vsel %vm213_vm7, %v212_v46, %v210_v47 }
  0xb8   : > { %v216_v53 = vsel %vm684_vm8, %v162_v13, %v214_v49  ;;  %v217_v54 = vsel %vm688_vm9, %v169_v15, %v215_v50 }
  0xb9   : > { %v224_v57 = vadd.f32 %v222_v48, %v216_v53  ;;  %v225_v58 = vadd.f32 %v223_v45, %v217_v54 }
  0xbb   : > { %v226_v59 = vmul.f32 -1.0, %v224_v57  ;;  %v227_v60 = vmul.f32 -1.0, %v225_v58 }
  0xbd   : > { %v228_v62 = vadd.f32 %v226_v59, %v218_v51  ;;  %v229_v63 = vadd.f32 %v227_v60, %v219_v56 }
  0xbf   : > { %v232_v0 = vcombine.low %v228_v62, %v229_v63 }
  0xc1   : > { %v239_v1 = vrot.slane %v232_v0, %v238_v61 }
  0xc3   : > { %v246_v2 = vrot.slane %v239_v1, %v238_v61 }
  0xc5   : > { %252 = vst.msk [vmem:[#allocation2] sm:$0x3] %vm250_vm10, %v246_v2 }
  0xcc   : > { %v253_v5 = vld [vmem:[#allocation2] sm:$0x3] }
  0xcd   : > { %v258_v6 = vrot.slane %v253_v5, %v257_v3  ;;  %v262_v7 = vrot.slane %v253_v5, %v261_v4 }
  0xcf   : > { %v263_v8 = vcombine.low %v258_v6, %v262_v7 }
  0xd1   : > { %265 = vst [vmem:[%s146_s26] sm:$0xff] %v263_v8 }
  0xd2   : > { %490 = shalt.err (!%p487_p3)
}
  0xd3   : > { %s491_s12 = scalar_lea.hbm %s281_s30, 128  ;;  %s495_s16 = scalar_lea.hbm %s743_s1, 256 }
  0xd4   : > { %p492_p5 = scmp.ne.s32.totalorder %s281_s30, %s491_s12  ;;  %p496_p10 = scmp.lt.s32.totalorder %s281_s30, %s743_s1 }
  0xd5   : > { %p497_p4 = scmp.lt.s32.totalorder %s495_s16, %s491_s12 }
  0xd6   : > { %p493_p6 = pnand %p492_p5, %p627_p9 }
  0xd7   : > { %p498_p13 = por %p497_p4, %p496_p10 }
  0xd8   : > { %p494_p7 = pneg %p493_p6 }
  0xda   : > { %p499_p8 = pnand %p498_p13, %p494_p7 }
  0xdc   : > { %502 = shalt.err (!%p499_p8)
}
  0xdd   : > { %383 = dma.vmem_to_hbm [thread:$0]  (%p627_p9), %s284_s27, 128, %s281_s30, %s267_s2  }
  0xde PF: > { %s295_s18 = sand.u32 1, %s537_s6   ;;  %p757_p11 = scmp.ne.s32.totalorder %s747_s21, 0 }
  0xdf   : > { %p758_p12 = scmp.ge.s32.totalorder %s557_s11, 2  ;;  %s296_s23 = scalar_lea.sflag [#allocation5], %s295_s18 }
  0xe1   : > { %p390_p0 = pnand %p758_p12, %p757_p11 }
  0xe3   : > { %p391_p1 = pneg %p390_p0 }
  0xe5   : > { %532 = dma.done.wait (%p391_p1), %s296_s23, 128  }
  0xe6   : > { %534 = vsyncadd (%p391_p1), %s296_s23, 4294967168  ;;  %s17_s11 = sadd.s32 1, %s557_s11   ;;  %s759_s6 = smov %s541_s7 }
  0xe7   : > { %p14_p2 = scmp.ge.s32.totalorder %s17_s11, 4   ;;  %s760_s7 = smov %s545_s8 }
  0xe8   : > { %s761_s8 = smov %s632_s20  ;;  %s762_s9 = smov %s553_s10 }
  0xe9   : > { %s763_s10 = smov %s765_s14  ;;  %16 = sbr.rel (!%p14_p2) target bundleno = 6 (0x6), region = 73 }
  0xee   :  { %301 = vsyncpa [#allocation4], 1 }
  0xef   :  { %303 = vsyncpa [#allocation4 + $0x1], 1 }
  0xf0   :  { %304 = vsyncpa [#allocation5], 1 }
  0xf1   :  { %306 = vsyncpa [#allocation5 + $0x1], 1 }

</bundles_post_ra>
